<compile_context>
chip_gen: v6e
topology: v6e:2x2x1
jax: 0.10.0
libtpu: 0.0.40
codegen_flags: <defaults>
</compile_context>

<pallas_src>
import jax
import jax.numpy as jnp
from jax.experimental import pallas as pl
from jax.experimental.pallas import tpu as pltpu


def attention_ffn_kernel(x_ref, w1t_ref, b1_ref, w2t_ref, b2_ref, g_ref, be_ref,
                         out_ref, attn_ref):
    Bt, L, D = x_ref.shape
    x = x_ref[...]                                               # (Bt, L, D)

    # --- ScaledDotProductAttention (scale=None, dropout=0) ---
    # contraction over the last axis: no in-kernel transpose of x.
    scores = jnp.einsum('bld,bmd->blm', x, x,
                        preferred_element_type=jnp.float32)      # (Bt, L, L)
    m = jnp.max(scores, axis=-1, keepdims=True)
    e = jnp.exp(scores - m)
    # exact divide: attn is checked at 1e-5 tolerance (approx recip would fail).
    attn = e / jnp.sum(e, axis=-1, keepdims=True)
    ctx = jnp.einsum('blm,bmd->bld', attn, x,
                     preferred_element_type=jnp.float32)         # (Bt, L, D)

    # --- PositionalWiseFeedForward: w2(relu(w1(ctx))) ---
    # flatten (batch, seq) -> rows; weights arrive pre-transposed, so both
    # matmuls contract on the last axis with no `.T` in-kernel.
    ctx2 = ctx.reshape(Bt * L, D)                                # (Bt*L, D)
    h = jnp.dot(ctx2, w1t_ref[...],
                preferred_element_type=jnp.float32) + b1_ref[...]
    h = jnp.maximum(h, 0.0)                                      # (Bt*L, F)
    o = jnp.dot(h, w2t_ref[...],
                preferred_element_type=jnp.float32) + b2_ref[...]

    # residual + LayerNorm(hidden_dim), PyTorch defaults: eps=1e-5, biased var
    res = ctx2 + o                                               # (Bt*L, D)
    mu = jnp.mean(res, axis=-1, keepdims=True)
    var = jnp.mean((res - mu) ** 2, axis=-1, keepdims=True)
    norm = (res - mu) * jax.lax.rsqrt(var + 1e-5)
    out_ref[...] = norm * g_ref[...] + be_ref[...]               # (Bt*L, D)
    attn_ref[...] = attn.reshape(Bt * L, L)                      # (Bt*L, L)


def _pick_block_b(batch):
    # Largest batch tile that still leaves >= 2 grid steps (v7x: 2 TensorCores,
    # batch axis is 'parallel'); fall back to the whole batch when B == 1.
    for bt in range(batch // 2, 0, -1):
        if batch % bt == 0:
            return bt
    return max(batch, 1)


def attention_forward(x, w1, b1, w2, b2, gamma, beta, block_b=None):
    B, L, D = x.shape
    F = w1.shape[0]
    Bt = _pick_block_b(B) if block_b is None else block_b
    assert B % Bt == 0
    grid_b = B // Bt

    # One-time layout plumbing outside the kernel:
    #  - pre-transpose the pointwise-conv weights,
    #  - biases / affine params as (1, C) rows for lane-friendly broadcast.
    w1t = jnp.asarray(w1).T            # (D, F)
    w2t = jnp.asarray(w2).T            # (F, D)
    b1r = b1.reshape(1, F)
    b2r = b2.reshape(1, D)
    gr = gamma.reshape(1, D)
    br = beta.reshape(1, D)

    out_shapes = (jax.ShapeDtypeStruct((B * L, D), jnp.float32),
                  jax.ShapeDtypeStruct((B * L, L), jnp.float32))

    const2d = lambda b: (0, 0)
    grid_spec = pltpu.PrefetchScalarGridSpec(
        num_scalar_prefetch=0,
        grid=(grid_b,),
        in_specs=[
            pl.BlockSpec((Bt, L, D), lambda b: (b, 0, 0)),   # x
            pl.BlockSpec((D, F), const2d),                   # w1^T  (D, ffn)
            pl.BlockSpec((1, F), const2d),                   # b1
            pl.BlockSpec((F, D), const2d),                   # w2^T  (ffn, D)
            pl.BlockSpec((1, D), const2d),                   # b2
            pl.BlockSpec((1, D), const2d),                   # gamma
            pl.BlockSpec((1, D), const2d),                   # beta
        ],
        out_specs=[
            pl.BlockSpec((Bt * L, D), lambda b: (b, 0)),     # output (flat rows)
            pl.BlockSpec((Bt * L, L), lambda b: (b, 0)),     # attention (flat rows)
        ],
    )

    out, attn = pl.pallas_call(
        attention_ffn_kernel,
        out_shape=out_shapes,
        grid_spec=grid_spec,
        compiler_params=pltpu.CompilerParams(
            dimension_semantics=("parallel",)),
    )(x, w1t, b1r, w2t, b2r, gr, br)

    # free wrapper-side reshapes back to the module's (B, L, *) layout
    return out.reshape(B, L, D), attn.reshape(B, L, L)


def reference_forward(x, w1, b1, w2, b2, gamma, beta):
    scores = jnp.einsum("bld,bmd->blm", x, x)
    attn = jax.nn.softmax(scores, axis=2)
    ctx = jnp.einsum("blm,bmd->bld", attn, x)
    h = jax.nn.relu(jnp.einsum("bld,fd->blf", ctx, w1) + b1)
    o = jnp.einsum("blf,df->bld", h, w2) + b2
    res = ctx + o
    mu = jnp.mean(res, axis=-1, keepdims=True)
    var = jnp.mean((res - mu) ** 2, axis=-1, keepdims=True)
    return (res - mu) / jnp.sqrt(var + 1e-5) * gamma + beta, attn


if __name__ == "__main__":
    B, L, D = 2, 8, 32          # batch, seq len, hidden_dim
    FFN = 4 * D                 # default ffn_dim = hidden_dim * 4

    key = jax.random.PRNGKey(0)
    kx, k1, kb1, k2, kb2, kg, kb = jax.random.split(key, 7)

    x = jax.random.normal(kx, (B, L, D), dtype=jnp.float32)

    # Conv1d(k=1) weights squeezed: (out_ch, in_ch)
    w1 = jax.random.normal(k1, (FFN, D), dtype=jnp.float32) * 0.05
    b1 = jax.random.normal(kb1, (FFN,), dtype=jnp.float32) * 0.05
    w2 = jax.random.normal(k2, (D, FFN), dtype=jnp.float32) * 0.05
    b2 = jax.random.normal(kb2, (D,), dtype=jnp.float32) * 0.05
    # LayerNorm affine params (PyTorch inits to ones/zeros; random here to
    # exercise the affine path — still deterministic).
    gamma = 1.0 + 0.1 * jax.random.normal(kg, (D,), dtype=jnp.float32)
    beta = 0.1 * jax.random.normal(kb, (D,), dtype=jnp.float32)

    out, attn = attention_forward(x, w1, b1, w2, b2, gamma, beta)
    out = jax.block_until_ready(out)
    attn = jax.block_until_ready(attn)

    ref_out, ref_attn = reference_forward(x, w1, b1, w2, b2, gamma, beta)
    assert jnp.allclose(out, ref_out, atol=1e-4, rtol=1e-4)
    assert jnp.allclose(attn, ref_attn, atol=1e-5, rtol=1e-5)

    print("KERNEL_OK")
</pallas_src>

<mosaic_0001>
module attributes {stable_mosaic.version = 11 : i64} {
  func.func @attention_ffn_kernel(%arg0: i32, %arg1: memref<1x8x32xf32, #tpu.memory_space<vmem>>, %arg2: memref<32x128xf32, #tpu.memory_space<vmem>>, %arg3: memref<1x128xf32, #tpu.memory_space<vmem>>, %arg4: memref<128x32xf32, #tpu.memory_space<vmem>>, %arg5: memref<1x32xf32, #tpu.memory_space<vmem>>, %arg6: memref<1x32xf32, #tpu.memory_space<vmem>>, %arg7: memref<1x32xf32, #tpu.memory_space<vmem>>, %arg8: memref<8x32xf32, #tpu.memory_space<vmem>>, %arg9: memref<8x8xf32, #tpu.memory_space<vmem>>) attributes {dimension_semantics = [#tpu.dimension_semantics<parallel>], iteration_bounds = array<i64: 2>, scalar_prefetch = 0 : i64, scratch_operands = 0 : i64, tpu.core_type = #tpu.core_type<tc>, window_params = [{transform_indices = @transform_0, window_bounds = array<i64: 1, 8, 32>}, {pipeline_mode = #tpu.pipeline_mode<synchronous>, transform_indices = @transform_1, window_bounds = array<i64: 32, 128>}, {pipeline_mode = #tpu.pipeline_mode<synchronous>, transform_indices = @transform_2, window_bounds = array<i64: 1, 128>}, {pipeline_mode = #tpu.pipeline_mode<synchronous>, transform_indices = @transform_3, window_bounds = array<i64: 128, 32>}, {pipeline_mode = #tpu.pipeline_mode<synchronous>, transform_indices = @transform_4, window_bounds = array<i64: 1, 32>}, {pipeline_mode = #tpu.pipeline_mode<synchronous>, transform_indices = @transform_5, window_bounds = array<i64: 1, 32>}, {pipeline_mode = #tpu.pipeline_mode<synchronous>, transform_indices = @transform_6, window_bounds = array<i64: 1, 32>}, {transform_indices = @transform_7, window_bounds = array<i64: 8, 32>}, {transform_indices = @transform_8, window_bounds = array<i64: 8, 8>}]} {
    %c0 = arith.constant 0 : index
    %c0_0 = arith.constant 0 : index
    %c0_1 = arith.constant 0 : index
    %0 = vector.load %arg1[%c0, %c0_0, %c0_1] : memref<1x8x32xf32, #tpu.memory_space<vmem>>, vector<1x8x32xf32>
    "tpu.trace_start"() <{level = 10 : i32, message = "bld,bmd->blm"}> : () -> ()
    %cst = arith.constant dense<0.000000e+00> : vector<1x8x8xf32>
    %1 = tpu.matmul %0, %0, %cst {dimension_numbers = #tpu.dot_dimension_numbers<[2], [2], [1], [1], [0, 0, 0, 1, 1, 1], [0], [0]>} : vector<1x8x32xf32>, vector<1x8x32xf32>, vector<1x8x8xf32> -> vector<1x8x8xf32>
    "tpu.trace_stop"() : () -> ()
    %cst_2 = arith.constant dense<0xFF800000> : vector<1x8xf32>
    %2 = vector.multi_reduction <maximumf>, %1, %cst_2 [2] : vector<1x8x8xf32> to vector<1x8xf32>
    %3 = vector.shape_cast %2 : vector<1x8xf32> to vector<1x8x1xf32>
    %4 = vector.broadcast %3 : vector<1x8x1xf32> to vector<1x8x8xf32>
    %5 = arith.subf %1, %4 : vector<1x8x8xf32>
    %6 = math.exp %5 : vector<1x8x8xf32>
    %cst_3 = arith.constant dense<0.000000e+00> : vector<1x8xf32>
    %7 = vector.multi_reduction <add>, %6, %cst_3 [2] : vector<1x8x8xf32> to vector<1x8xf32>
    %8 = vector.shape_cast %7 : vector<1x8xf32> to vector<1x8x1xf32>
    %9 = vector.broadcast %8 : vector<1x8x1xf32> to vector<1x8x8xf32>
    %10 = arith.divf %6, %9 : vector<1x8x8xf32>
    "tpu.trace_start"() <{level = 10 : i32, message = "blm,bmd->bld"}> : () -> ()
    %cst_4 = arith.constant dense<0.000000e+00> : vector<1x8x32xf32>
    %11 = tpu.matmul %10, %0, %cst_4 {dimension_numbers = #tpu.dot_dimension_numbers<[2], [1], [1], [2], [0, 0, 0, 1, 1, 2], [0], [0]>} : vector<1x8x8xf32>, vector<1x8x32xf32>, vector<1x8x32xf32> -> vector<1x8x32xf32>
    "tpu.trace_stop"() : () -> ()
    %12 = vector.shape_cast %11 : vector<1x8x32xf32> to vector<8x32xf32>
    %c0_5 = arith.constant 0 : index
    %c0_6 = arith.constant 0 : index
    %13 = vector.load %arg2[%c0_5, %c0_6] : memref<32x128xf32, #tpu.memory_space<vmem>>, vector<32x128xf32>
    %cst_7 = arith.constant dense<0.000000e+00> : vector<8x128xf32>
    %14 = tpu.matmul %12, %13, %cst_7 {dimension_numbers = #tpu.dot_dimension_numbers<[1], [0], [0], [1], [0, 0, 1, 1], [], []>} : vector<8x32xf32>, vector<32x128xf32>, vector<8x128xf32> -> vector<8x128xf32>
    %c0_8 = arith.constant 0 : index
    %c0_9 = arith.constant 0 : index
    %15 = vector.load %arg3[%c0_8, %c0_9] : memref<1x128xf32, #tpu.memory_space<vmem>>, vector<1x128xf32>
    %16 = vector.broadcast %15 : vector<1x128xf32> to vector<8x128xf32>
    %17 = arith.addf %14, %16 : vector<8x128xf32>
    %cst_10 = arith.constant 0.000000e+00 : f32
    %18 = vector.broadcast %cst_10 : f32 to vector<8x128xf32>
    %19 = arith.maximumf %17, %18 : vector<8x128xf32>
    %c0_11 = arith.constant 0 : index
    %c0_12 = arith.constant 0 : index
    %20 = vector.load %arg4[%c0_11, %c0_12] : memref<128x32xf32, #tpu.memory_space<vmem>>, vector<128x32xf32>
    %cst_13 = arith.constant dense<0.000000e+00> : vector<8x32xf32>
    %21 = tpu.matmul %19, %20, %cst_13 {dimension_numbers = #tpu.dot_dimension_numbers<[1], [0], [0], [1], [0, 0, 1, 1], [], []>} : vector<8x128xf32>, vector<128x32xf32>, vector<8x32xf32> -> vector<8x32xf32>
    %c0_14 = arith.constant 0 : index
    %c0_15 = arith.constant 0 : index
    %22 = vector.load %arg5[%c0_14, %c0_15] : memref<1x32xf32, #tpu.memory_space<vmem>>, vector<1x32xf32>
    %23 = vector.broadcast %22 : vector<1x32xf32> to vector<8x32xf32>
    %24 = arith.addf %21, %23 : vector<8x32xf32>
    %25 = arith.addf %12, %24 : vector<8x32xf32>
    %cst_16 = arith.constant dense<0.000000e+00> : vector<8xf32>
    %26 = vector.multi_reduction <add>, %25, %cst_16 [1] : vector<8x32xf32> to vector<8xf32>
    %27 = vector.shape_cast %26 : vector<8xf32> to vector<8x1xf32>
    %cst_17 = arith.constant 3.200000e+01 : f32
    %28 = vector.broadcast %cst_17 : f32 to vector<8x1xf32>
    %29 = arith.divf %27, %28 : vector<8x1xf32>
    %30 = vector.broadcast %29 : vector<8x1xf32> to vector<8x32xf32>
    %31 = arith.subf %25, %30 : vector<8x32xf32>
    %32 = arith.mulf %31, %31 : vector<8x32xf32>
    %cst_18 = arith.constant dense<0.000000e+00> : vector<8xf32>
    %33 = vector.multi_reduction <add>, %32, %cst_18 [1] : vector<8x32xf32> to vector<8xf32>
    %34 = vector.shape_cast %33 : vector<8xf32> to vector<8x1xf32>
    %cst_19 = arith.constant 3.200000e+01 : f32
    %35 = vector.broadcast %cst_19 : f32 to vector<8x1xf32>
    %36 = arith.divf %34, %35 : vector<8x1xf32>
    %37 = vector.broadcast %29 : vector<8x1xf32> to vector<8x32xf32>
    %38 = arith.subf %25, %37 : vector<8x32xf32>
    %cst_20 = arith.constant 9.99999974E-6 : f32
    %39 = vector.broadcast %cst_20 : f32 to vector<8x1xf32>
    %40 = arith.addf %36, %39 : vector<8x1xf32>
    %41 = math.rsqrt %40 : vector<8x1xf32>
    %42 = vector.broadcast %41 : vector<8x1xf32> to vector<8x32xf32>
    %43 = arith.mulf %38, %42 : vector<8x32xf32>
    %c0_21 = arith.constant 0 : index
    %c0_22 = arith.constant 0 : index
    %44 = vector.load %arg6[%c0_21, %c0_22] : memref<1x32xf32, #tpu.memory_space<vmem>>, vector<1x32xf32>
    %45 = vector.broadcast %44 : vector<1x32xf32> to vector<8x32xf32>
    %46 = arith.mulf %43, %45 : vector<8x32xf32>
    %c0_23 = arith.constant 0 : index
    %c0_24 = arith.constant 0 : index
    %47 = vector.load %arg7[%c0_23, %c0_24] : memref<1x32xf32, #tpu.memory_space<vmem>>, vector<1x32xf32>
    %48 = vector.broadcast %47 : vector<1x32xf32> to vector<8x32xf32>
    %49 = arith.addf %46, %48 : vector<8x32xf32>
    %c0_25 = arith.constant 0 : index
    %c0_26 = arith.constant 0 : index
    %50 = vector.load %arg8[%c0_25, %c0_26] : memref<8x32xf32, #tpu.memory_space<vmem>>, vector<8x32xf32>
    tpu.vector_store %arg8[%c0_25, %c0_26], %49 {strides = array<i32>} : memref<8x32xf32, #tpu.memory_space<vmem>>, vector<8x32xf32>,
    %51 = vector.shape_cast %10 : vector<1x8x8xf32> to vector<8x8xf32>
    %c0_27 = arith.constant 0 : index
    %c0_28 = arith.constant 0 : index
    %52 = vector.load %arg9[%c0_27, %c0_28] : memref<8x8xf32, #tpu.memory_space<vmem>>, vector<8x8xf32>
    tpu.vector_store %arg9[%c0_27, %c0_28], %51 {strides = array<i32>} : memref<8x8xf32, #tpu.memory_space<vmem>>, vector<8x8xf32>,
    return
  }
  func.func @transform_0(%arg0: i32) -> (i32, i32, i32) {
    %c0_i32 = arith.constant 0 : i32
    %c0_i32_0 = arith.constant 0 : i32
    %c0_i32_1 = arith.constant 0 : i32
    return %arg0, %c0_i32, %c0_i32_0 : i32, i32, i32
  }
  func.func @transform_1(%arg0: i32) -> (i32, i32) {
    %c0_i32 = arith.constant 0 : i32
    %c0_i32_0 = arith.constant 0 : i32
    %c0_i32_1 = arith.constant 0 : i32
    return %c0_i32, %c0_i32_0 : i32, i32
  }
  func.func @transform_2(%arg0: i32) -> (i32, i32) {
    %c0_i32 = arith.constant 0 : i32
    %c0_i32_0 = arith.constant 0 : i32
    %c0_i32_1 = arith.constant 0 : i32
    return %c0_i32, %c0_i32_0 : i32, i32
  }
  func.func @transform_3(%arg0: i32) -> (i32, i32) {
    %c0_i32 = arith.constant 0 : i32
    %c0_i32_0 = arith.constant 0 : i32
    %c0_i32_1 = arith.constant 0 : i32
    return %c0_i32, %c0_i32_0 : i32, i32
  }
  func.func @transform_4(%arg0: i32) -> (i32, i32) {
    %c0_i32 = arith.constant 0 : i32
    %c0_i32_0 = arith.constant 0 : i32
    %c0_i32_1 = arith.constant 0 : i32
    return %c0_i32, %c0_i32_0 : i32, i32
  }
  func.func @transform_5(%arg0: i32) -> (i32, i32) {
    %c0_i32 = arith.constant 0 : i32
    %c0_i32_0 = arith.constant 0 : i32
    %c0_i32_1 = arith.constant 0 : i32
    return %c0_i32, %c0_i32_0 : i32, i32
  }
  func.func @transform_6(%arg0: i32) -> (i32, i32) {
    %c0_i32 = arith.constant 0 : i32
    %c0_i32_0 = arith.constant 0 : i32
    %c0_i32_1 = arith.constant 0 : i32
    return %c0_i32, %c0_i32_0 : i32, i32
  }
  func.func @transform_7(%arg0: i32) -> (i32, i32) {
    %c0_i32 = arith.constant 0 : i32
    %c0_i32_0 = arith.constant 0 : i32
    return %arg0, %c0_i32 : i32, i32
  }
  func.func @transform_8(%arg0: i32) -> (i32, i32) {
    %c0_i32 = arith.constant 0 : i32
    %c0_i32_0 = arith.constant 0 : i32
    return %arg0, %c0_i32 : i32, i32
  }
}

</mosaic_0001>

<bundles_post_ra>
// kernel: tpu_custom_call.1
= control target key start
LH: loop header
LB: loop body
LE: loop exit
PB: predicated region body
PF: predicated region fallthrough
CT: control target
= control target key end

     0   :  { %14 = vsyncpa [#allocation3], 0  ;;  %s1250_s0 = inlined_call_operand.vmem [shape: f32[2,8,32], index: 0, kind: input, shape index: {}]   ;;  %s1251_s1 = inlined_call_operand.vmem [shape: f32[32,128], index: 1, kind: input, shape index: {}]   ;;  %s1252_s2 = inlined_call_operand.vmem [shape: f32[1,128], index: 2, kind: input, shape index: {}]   ;;  %s1253_s3 = inlined_call_operand.vmem [shape: f32[128,32], index: 3, kind: input, shape index: {}]   ;;  %s1254_s4 = inlined_call_operand.vmem [shape: f32[1,32], index: 4, kind: input, shape index: {}]   ;;  %s1255_s5 = inlined_call_operand.vmem [shape: f32[1,32], index: 5, kind: input, shape index: {}]   ;;  %s1256_s6 = inlined_call_operand.vmem [shape: f32[1,32], index: 6, kind: input, shape index: {}]   ;;  %s1257_s7 = inlined_call_operand.hbm [shape: f32[16,32], index: 7, kind: output, shape index: {0}]   ;;  %s1258_s8 = inlined_call_operand.vmem [shape: f32[16,8], index: 8, kind: output, shape index: {1}]  }
   0x1   :  { %16 = vsyncpa [#allocation3 + $0x1], 0  ;;  %s1045_s27 = smov 0   ;;  %s1047_s28 = smov 0  }
   0x2   :  { %s1049_s29 = smov 0   ;;  %s1051_s30 = smov 0  }
   0x3 LB: > { %s1066_s9 = sadd.s32 4294967295, %s995_s30   ;;  %s787_s10 = sadd.s32 4294967294, %s995_s30   ;;  %s995_s30 = sphi %s1051_s30, %s1264_s30   ;;  %s991_s29 = sphi %s1049_s29, %s1263_s29   ;;  %s987_s28 = sphi %s1047_s28, %s1262_s28   ;;  %s983_s27 = sphi %s1045_s27, %s1261_s27  }
   0x4   : > { %s1070_s11 = sadd.s32 1, %s995_s30   ;;  %s181_s12 = sadd.s32 1, %s991_s29 }
   0x5   : > { %s178_s13 = ssub.s32 %s995_s30, %s1070_s11  ;;  %p191_p0 = scmp.ne.s32.totalorder %s991_s29, %s987_s28 }
   0x6   : > { %p179_p1 = scmp.eq.s32.totalorder %s178_s13, 0  ;;  %p192_p2 = scmp.eq.s32.totalorder %s1066_s9, 1 }
   0x7   : > { %p197_p3 = scmp.ne.s32.totalorder %s987_s28, %s983_s27  ;;  %p198_p4 = scmp.eq.s32.totalorder %s787_s10, 1 }
   0x8   : > { %s1081_s14 = scalar_select %p179_p1, %s991_s29, %s181_s12  }
   0x9   : > { %p1083_p5 = por %p192_p2, %p191_p0  ;;  %p1087_p6 = por %p198_p4, %p197_p3 }
   0xa   : > { %p790_p7 = scmp.ge.s32.totalorder %s995_s30, 1  ;;  %p267_p8 = scmp.lt.s32.totalorder %s995_s30, 3 }
   0xc   : > { %p268_p9 = pnand %p790_p7, %p267_p8 }
   0xd   : > { %p304_p10 = scmp.lt.s32.totalorder (!%p268_p9), %s1066_s9, 1  ;;  %s803_s23 = sshll.u32 (!%p268_p9), %s1066_s9, 7 }
   0xe   : > { %271 = sbr.rel (%p268_p9) target bundleno = 1440 (0x5a0), region = 48  ;;  %s699_s12 = scalar_lea.hbm (!%p268_p9), %s1257_s7, %s803_s23 }
   0xf   : > { %s999_s20 = smov (!%p268_p9), [#allocation2]  }
  0x13   : > { %v997_v0 = vmov 0.0   ;;  %vm998_vm0 = vmmov 0   ;;  %s1098_s17 = scalar_select %p304_p10, %s1066_s9, 1  ;;  %vm313_vm1 = vcmask 261120   ;;  %vm387_vm2 = vcmask 64512   ;;  %v475_v13 = vld [vmem:[%s1251_s1 + $0x18] sm:$0xff] }
  0x14   : > { %832 = vmatprep.subr.mxu1 %v997_v0  ;;  %834 = vmatprep.mubr.msk.f32.mxu1 %vm998_vm0, %v997_v0  ;;  %v474_v14 = vld [vmem:[%s1251_s1 + $0x10] sm:$0xff]  ;;  %v473_v15 = vld [vmem:[%s1251_s1 + $0x8] sm:$0xff]  ;;  %v472_v16 = vld [vmem:[%s1251_s1] sm:$0xff] }
  0x15   : > { %853 = vmatprep.subr.mxu0 %v997_v0  ;;  %885 = vmatprep.mubr.msk.f32.mxu0 %vm998_vm0, %v997_v0  ;;  %s792_s18 = sshll.u32 %s1098_s17, 3  ;;  %v572_v17 = vld [vmem:[%s1253_s3 + $0x78] sm:$0xff]  ;;  %v571_v18 = vld [vmem:[%s1253_s3 + $0x70] sm:$0xff]  ;;  %v570_v19 = vld [vmem:[%s1253_s3 + $0x68] sm:$0xff]  ;;  %s295_s17 = sand.u32 1, %s987_s28  }
  0x16   : > { %s307_s21 = scalar_lea.vmem %s1250_s0, %s792_s18  ;;  %s311_s24 = scalar_lea.vmem %s1258_s8, %s792_s18  ;;  %854 = vmatpush3.msra.mxu0 %v572_v17  ;;  %v569_v20 = vld [vmem:[%s1253_s3 + $0x60] sm:$0xff]  ;;  %v568_v21 = vld [vmem:[%s1253_s3 + $0x58] sm:$0xff]  ;;  %v567_v22 = vld [vmem:[%s1253_s3 + $0x50] sm:$0xff] }
  0x17   : > { %v312_v1 = vld [vmem:[%s307_s21] sm:$0xff]  ;;  %855 = vmatprep.subr.mxu0 %v997_v0  ;;  %v566_v23 = vld [vmem:[%s1253_s3 + $0x48] sm:$0xff]  ;;  %v564_v25 = vld [vmem:[%s1253_s3 + $0x38] sm:$0xff]  ;;  %s791_s18 = sshll.u32 %s295_s17, 3  ;;  %s684_s13 = scalar_lea.sflag [#allocation3], %s295_s17 }
  0x18   : > { %833 = vmatpush3.xpose.msk.msra.mxu1 %vm313_vm1, %v312_v1  ;;  %856 = vmatpush3.msra.mxu0 %v571_v18  ;;  %v565_v24 = vld [vmem:[%s1253_s3 + $0x40] sm:$0xff]  ;;  %v563_v26 = vld [vmem:[%s1253_s3 + $0x30] sm:$0xff]  ;;  %v562_v27 = vld [vmem:[%s1253_s3 + $0x28] sm:$0xff]  ;;  %s939_s21 = sshll.u32 %s999_s20, 4  ;;  %s940_s21 = int_to_ptr.vmem [resolvable:$false] %s939_s21 }
  0x19   : > { %837 = vmatprep.subr.mxu1 %v997_v0  ;;  %857 = vmatprep.subr.mxu0 %v997_v0  ;;  %v561_v28 = vld [vmem:[%s1253_s3 + $0x20] sm:$0xff]  ;;  %v560_v29 = vld [vmem:[%s1253_s3 + $0x18] sm:$0xff]  ;;  %v559_v32 = vld [vmem:[%s1253_s3 + $0x10] sm:$0xff]  ;;  %s941_s9 = scalar_lea.vmem %s940_s21, 256 }
  0x1a   : > { %858 = vmatpush3.msra.mxu0 %v570_v19  ;;  %v558_v33 = vld [vmem:[%s1253_s3 + $0x8] sm:$0xff]  ;;  %v557_v34 = vld [vmem:[%s1253_s3] sm:$0xff] }
  0x1b   : > { %835 = vmatmul.mubr.msk.f32.vlgmr.msra.gmra.mxu1 %vm313_vm1, %v312_v1  ;;  %859 = vmatprep.subr.mxu0 %v997_v0  ;;  %v797_v35 = vld [vmem:[%s1252_s2] ss:$0 sm:$0xff] }
  0x1c   : > { %838 = vmatpush3.msra.mxu1 %v312_v1  ;;  %839 = vmatprep.mubr.msk.f32.mxu1 %vm998_vm0, %v997_v0  ;;  %v799_v40 = vld [vmem:[%s1254_s4] ss:$0 sm:$0xff] }
  0x1d   : > { %842 = vmatprep.subr.mxu1 %v997_v0  ;;  %860 = vmatpush3.msra.mxu0 %v569_v20  ;;  %v800_v55 = vld [vmem:[%s1255_s5] ss:$0 sm:$0xff] }
  0x1e   : > { %861 = vmatprep.subr.mxu0 %v997_v0  ;;  %v801_v57 = vld [vmem:[%s1256_s6] ss:$0 sm:$0xff] }
  0x1f   : > { %862 = vmatpush3.msra.mxu0 %v568_v21 }
  0x20   : > { %863 = vmatprep.subr.mxu0 %v997_v0 }
  0x21   : > { %864 = vmatpush3.msra.mxu0 %v567_v22 }
  0x22   : > { %865 = vmatprep.subr.mxu0 %v997_v0 }
  0x23   : > { %866 = vmatpush3.msra.mxu0 %v566_v23 }
  0x24   : > { %867 = vmatprep.subr.mxu0 %v997_v0 }
  0x25   : > { %868 = vmatpush3.msra.mxu0 %v565_v24 }
  0x26   : > { %869 = vmatprep.subr.mxu0 %v997_v0 }
  0x27   : > { %870 = vmatpush3.msra.mxu0 %v564_v25 }
  0x28   : > { %871 = vmatprep.subr.mxu0 %v997_v0 }
  0x29   : > { %872 = vmatpush3.msra.mxu0 %v563_v26 }
  0x2a   : > { %873 = vmatprep.subr.mxu0 %v997_v0 }
  0x2b   : > { %874 = vmatpush3.msra.mxu0 %v562_v27 }
  0x2c   : > { %875 = vmatprep.subr.mxu0 %v997_v0 }
  0x2d   : > { %876 = vmatpush3.msra.mxu0 %v561_v28 }
  0x2e   : > { %877 = vmatprep.subr.mxu0 %v997_v0 }
  0x2f   : > { %878 = vmatpush3.msra.mxu0 %v560_v29 }
  0x30   : > { %879 = vmatprep.subr.mxu0 %v997_v0 }
  0x31   : > { %880 = vmatpush3.msra.mxu0 %v559_v32 }
  0x32   : > { %881 = vmatprep.subr.mxu0 %v997_v0 }
  0x33   : > { %882 = vmatpush3.msra.mxu0 %v558_v33 }
  0x34   : > { %883 = vmatprep.subr.mxu0 %v997_v0 }
  0x35   : > { %884 = vmatpush3.msra.mxu0 %v557_v34 }
  0xdb   : > { %v383_v2 = vpop.f32.mrf.mxu1 }
  0xdc   : > { %v388_v3 = vsel %vm387_vm2, %v383_v2, -inf }
  0xdd   : > { %389 = vmax.xlane.f32.xlu0 %v388_v3  ;;  %v836_v4 = vpop.f32.mrf.mxu1 }
 0x166   : > { %v390_v5 = vpop.xlane.xlu0 %389 }
 0x167   : > { %v391_v6 = vsub.f32 %v383_v2, %v390_v5 }
 0x169   : > { %v392_v7 = vmul.f32 1.442695, %v391_v6 }
 0x16b   : > { %929 = vpow2.f32 %v392_v7 }
 0x178   : > { %v930_v8 = vpop.eup %929 }
 0x179   : > { %v394_v9 = vsel %vm387_vm2, %v930_v8, 0.0 }
 0x17a   : > { %395 = vadd.xlane.f32.xlu0 %v394_v9 }
 0x203   : > { %v396_v10 = vpop.xlane.xlu0 %395 }
 0x204   : > { %931 = vrcp.f32 %v396_v10 }
 0x211   : > { %v932_v11 = vpop.eup %931 }
 0x212   : > { %v398_v12 = vmul.f32 %v932_v11, %v930_v8 }
 0x214   : > { %840 = vmatmul.mubr.msk.f32.vlgmr.msra.gmra.mxu1 %vm387_vm2, %v398_v12  ;;  %682 = vst.msk [vmem:[%s311_s24] sm:$0xff] %vm387_vm2, %v398_v12  ;;  %s297_s24 = scalar_lea.vmem [#allocation2], %s791_s18 }
 0x215   : > { %843 = vmatpush3.msra.mxu1 %v475_v13  ;;  %850 = vmatprep.mubr.msk.f32.mxu1 %vm998_vm0, %v997_v0  ;;  %s701_s25 = sshll.u32 %s297_s24, 4  ;;  %s702_s25 = int_to_ptr.vmem [resolvable:$true] %s701_s25 }
 0x216   : > { %844 = vmatprep.subr.mxu1 %v997_v0  ;;  %s935_s19 = scalar_lea.vmem %s702_s25, 128  ;;  %p942_p0 = scmp.lt.s32.totalorder %s702_s25, %s940_s21 }
 0x217   : > { %845 = vmatpush3.msra.mxu1 %v474_v14  ;;  %p936_p11 = scmp.ne.s32.totalorder %s702_s25, %s935_s19  ;;  %p943_p1 = scmp.lt.s32.totalorder %s941_s9, %s935_s19 }
 0x218   : > { %846 = vmatprep.subr.mxu1 %v997_v0 }
 0x219   : > { %847 = vmatpush3.msra.mxu1 %v473_v15  ;;  %p937_p12 = pnand %p936_p11, %p1083_p5  ;;  %p944_p2 = por %p943_p1, %p942_p0 }
 0x21a   : > { %848 = vmatprep.subr.mxu1 %v997_v0 }
 0x21b   : > { %849 = vmatpush3.msra.mxu1 %v472_v16  ;;  %p938_p13 = pneg %p937_p12 }
 0x21d   : > { %p945_p3 = pnand %p944_p2, %p938_p13 }
 0x2d4   : > { %v468_v30 = vpop.f32.mrf.mxu1 }
 0x2d5   : > { %851 = vmatmul.mubr.msk.f32.vlgmr.msra.gmra.mxu1 %vm313_vm1, %v468_v30 }
 0x2d6   : > { %v841_v31 = vpop.f32.mrf.mxu1 }
 0x395   : > { %v552_v36 = vpop.f32.mrf.mxu1 }
 0x396   : > { %v553_v37 = vadd.f32 %v797_v35, %v552_v36 }
 0x397   : > { %v852_v38 = vpop.f32.mrf.mxu1 }
 0x398   : > { %v556_v39 = vmax.f32 %v553_v37, 0.0 }
 0x39a   : > { %886 = vmatmul.mubr.f32.vlgmr.msra.gmra.mxu0 %v556_v39 }
 0x45a   : > { %v646_v41 = vpop.f32.mrf.mxu0 }
 0x45b   : > { %v647_v42 = vadd.f32 %v799_v40, %v646_v41 }
 0x45c   : > { %v887_v43 = vpop.f32.mrf.mxu0 }
 0x45d   : > { %v650_v44 = vadd.f32 %v647_v42, %v468_v30 }
 0x45f   : > { %v651_v45 = vsel %vm313_vm1, %v650_v44, 0.0 }
 0x460   : > { %652 = vadd.xlane.f32.xlu1 %v651_v45 }
 0x4e9   : > { %v653_v46 = vpop.xlane.xlu1 %652 }
 0x4ea   : > { %v655_v47 = vmul.f32 0.03125, %v653_v46 }
 0x4ec   : > { %v656_v48 = vsub.f32 %v650_v44, %v655_v47 }
 0x4ee   : > { %v657_v49 = vmul.f32 %v656_v48, %v656_v48 }
 0x4f0   : > { %v658_v50 = vsel %vm313_vm1, %v657_v49, 0.0 }
 0x4f1   : > { %659 = vadd.xlane.f32.xlu1 %v658_v50 }
 0x57a   : > { %v660_v51 = vpop.xlane.xlu1 %659 }
 0x57b   : > { %v661_v52 = vmul.f32 0.03125, %v660_v51 }
 0x57d   : > { %v662_v53 = vadd.f32 1e-05, %v661_v52 }
 0x57f   : > { %933 = vrsqrt.f32 %v662_v53 }
 0x58c   : > { %v934_v54 = vpop.eup %933 }
 0x58d   : > { %v664_v56 = vmul.f32 %v934_v54, %v656_v48 }
 0x58f   : > { %v672_v58 = vmul.f32 %v800_v55, %v664_v56 }
 0x591   : > { %v680_v59 = vadd.f32 %v801_v57, %v672_v58 }
 0x593   : > { %681 = vst.msk [vmem:[%s297_s24] sm:$0xff] %vm313_vm1, %v680_v59 }
 0x594   : > { %948 = shalt.err (!%p945_p3)
}
 0x595   : > { %s949_s18 = scalar_lea.hbm %s699_s12, 128  ;;  %s953_s23 = scalar_lea.hbm %s1257_s7, 256 }
 0x596   : > { %p950_p4 = scmp.ne.s32.totalorder %s699_s12, %s949_s18  ;;  %p954_p9 = scmp.lt.s32.totalorder %s699_s12, %s1257_s7 }
 0x597   : > { %p955_p10 = scmp.lt.s32.totalorder %s953_s23, %s949_s18 }
 0x598   : > { %p951_p7 = pnand %p950_p4, %p1083_p5 }
 0x599   : > { %p956_p11 = por %p955_p10, %p954_p9 }
 0x59a   : > { %p952_p8 = pneg %p951_p7 }
 0x59c   : > { %p957_p12 = pnand %p956_p11, %p952_p8 }
 0x59e   : > { %960 = shalt.err (!%p957_p12)
}
 0x59f   : > { %888 = dma.vmem_to_hbm [thread:$0]  (%p1083_p5), %s702_s25, 128, %s699_s12, %s684_s13  }
 0x5a0 PF: > { %p894_p13 = scmp.ge.s32.totalorder %s995_s30, 2  ;;  %s716_s10 = sand.u32 1, %s983_s27  }
 0x5a1   : > { %s717_s19 = scalar_lea.sflag [#allocation3], %s716_s10 }
 0x5a2   : > { %p891_p0 = pnand %p894_p13, %p1087_p6 }
 0x5a4   : > { %p892_p1 = pneg %p891_p0 }
 0x5a6   : > { %978 = dma.done.wait (%p892_p1), %s717_s19, 128  }
 0x5a7   : > { %980 = vsyncadd (%p892_p1), %s717_s19, 4294967168  ;;  %p19_p2 = scmp.ge.s32.totalorder %s1070_s11, 4   ;;  %s1261_s27 = smov %s987_s28 }
 0x5a8   : > { %s1262_s28 = smov %s991_s29  ;;  %s1263_s29 = smov %s1081_s14 }
 0x5a9   : > { %s1264_s30 = smov %s1070_s11  ;;  %21 = sbr.rel (!%p19_p2) target bundleno = 3 (0x3), region = 95 }
 0x5ae   :  { %729 = vsyncpa [#allocation3], 1 }
 0x5af   :  { %731 = vsyncpa [#allocation3 + $0x1], 1 }

</bundles_post_ra>
